<compile_context>
chip_gen: v7x
topology: tpu7x:2x2x1
jax: 0.10.0
libtpu: 0.0.40
codegen_flags: <defaults>
</compile_context>

<pallas_src>
import functools

import jax
import jax.numpy as jnp
from jax import lax
from jax.experimental import pallas as pl
from jax.experimental.pallas import tpu as pltpu

ALPHA = 0.75
GAMMA = 2.0            # hard-wired as an explicit square in the kernel (gamma == 2)
POS_CLASS_WEIGHT = 2.0

LANES = 128
SUBLANES = 8
# Per-input, per-pipeline-buffer VMEM budget (f32).  2 inputs x 2 buffers x 2 MiB
# = 8 MiB -> fits the scoped-VMEM default on v5e/v6e/v7x with no override.
DEFAULT_BLOCK_BYTES = 2 * 1024 * 1024


def _cdiv(a, b):
    return -(-a // b)


def _ceil_to(x, m):
    return _cdiv(x, m) * m


def _tiling(rows, last, block_bytes):
    """Balanced (block_rows, steps): compute steps first, then even blocks."""
    bytes_per_row = _ceil_to(last, LANES) * 4          # f32 VMEM footprint per row
    cap = max(SUBLANES, (block_bytes // bytes_per_row) // SUBLANES * SUBLANES)
    steps = _cdiv(rows, cap)
    if steps == 1:
        # Single full-extent block: exempt from the (8,) sublane constraint and
        # needs no masking at all.
        return rows, 1
    block_rows = _ceil_to(_cdiv(rows, steps), SUBLANES)
    steps = _cdiv(rows, block_rows)
    return block_rows, steps


def _make_kernel(tail_rows, ragged):
    def kernel(x_ref, t_ref, out_ref):
        x = x_ref[...].astype(jnp.float32)
        t = t_ref[...].astype(jnp.float32)

        # Hard {0,1} targets, matching `weights[targets == 1]` in the module.
        pos = t == 1.0
        # Logit "towards the true class": z = x if t==1 else -x.
        z = jnp.where(pos, x, -x)
        e = jnp.exp(-jnp.abs(z))                              # EUP
        bce = jnp.maximum(-z, 0.0) + jnp.log1p(e)             # stable BCE-with-logits
        # 1 - pt = sigmoid(-z) = where(z>=0, e, 1) / (1+e), computed directly
        # (no cancellation) with the EUP approximate reciprocal.
        one_m_pt = jnp.where(z >= 0.0, e, 1.0) * pl.reciprocal(1.0 + e, approx=True)
        # alpha folded into the class weight: w = alpha * (pos ? 2 : 1).
        w = jnp.where(pos, ALPHA * POS_CLASS_WEIGHT, ALPHA)
        wf = w * (one_m_pt * one_m_pt) * bce                  # gamma == 2 -> square

        if not ragged:
            out_ref[...] = jnp.sum(wf, axis=0, keepdims=True)[None]
        else:
            # Only the final grid block is partially out-of-bounds (garbage
            # rows beyond the array); only it pays for the row mask.
            is_last = pl.program_id(0) == pl.num_programs(0) - 1

            @pl.when(jnp.logical_not(is_last))
            def _():
                out_ref[...] = jnp.sum(wf, axis=0, keepdims=True)[None]

            @pl.when(is_last)
            def _():
                rid = lax.broadcasted_iota(jnp.int32, wf.shape, 0)
                wfm = jnp.where(rid < tail_rows, wf, 0.0)
                out_ref[...] = jnp.sum(wfm, axis=0, keepdims=True)[None]

    return kernel


@functools.partial(jax.jit, static_argnames=("block_bytes",))
def focal_loss(inputs, targets, *, block_bytes=DEFAULT_BLOCK_BYTES):
    """Equivalent of FocalLoss(alpha=0.75, gamma=2.0, pos_class_weight=2.0)."""
    assert inputs.shape == targets.shape
    n = inputs.size
    assert n > 0

    # Copy-free 2D view (pure bitcast reshape, never a pad):
    #   lane-aligned element count -> (n/128, 128): 100% lane utilization;
    #   otherwise keep the tensor's own last dim as the lane dim.
    if n % LANES == 0:
        last = LANES
    else:
        last = inputs.shape[-1] if inputs.ndim >= 1 else 1
    rows = n // last
    x2d = inputs.reshape(rows, last)
    # Streamed in their incoming dtype; the kernel upcasts to f32 internally.
    t2d = targets.reshape(rows, last)

    block_rows, steps = _tiling(rows, last, block_bytes)
    tail_rows = rows - (steps - 1) * block_rows
    ragged = tail_rows != block_rows

    in_spec = pl.BlockSpec((block_rows, last), lambda i: (i, 0))
    partials = pl.pallas_call(
        _make_kernel(tail_rows, ragged),
        out_shape=jax.ShapeDtypeStruct((steps, 1, last), jnp.float32),
        grid_spec=pltpu.PrefetchScalarGridSpec(
            num_scalar_prefetch=0,
            grid=(steps,),
            in_specs=[in_spec, in_spec],
            out_specs=pl.BlockSpec((1, 1, last), lambda i: (i, 0, 0)),
        ),
        compiler_params=pltpu.CompilerParams(
            # Independent per-step partial sums -> the single axis is "parallel":
            # v7x splits it across its two TensorCores; v5e/v6e pay nothing.
            dimension_semantics=("parallel",),
        ),
    )(x2d, t2d)

    return (jnp.sum(partials) / n).astype(jnp.float32)


def _reference(inputs, targets):
    x = inputs.astype(jnp.float32)
    t = targets.astype(jnp.float32)
    bce = jnp.maximum(x, 0.0) - x * t + jnp.log1p(jnp.exp(-jnp.abs(x)))
    pt = jnp.exp(-bce)
    focal = ALPHA * (1.0 - pt) ** GAMMA * bce
    w = jnp.where(t == 1.0, POS_CLASS_WEIGHT, 1.0)
    return jnp.mean(w * focal)


if __name__ == "__main__":
    key = jax.random.PRNGKey(0)
    k1, k2, k3, k4 = jax.random.split(key, 4)

    # Tolerance accommodates the EUP approximate reciprocal (a few ULPs/element).
    TOL = dict(atol=1e-4, rtol=1e-4)

    # 1) Lane-aligned NCHW shape (fast path: (n/128, 128) bitcast view).
    B, C, H, W = 2, 4, 16, 16
    x1 = jax.random.normal(k1, (B, C, H, W), dtype=jnp.float32)            # logits
    t1 = jax.random.bernoulli(k2, p=0.3, shape=(B, C, H, W)).astype(jnp.float32)
    loss1 = focal_loss(x1, t1)
    jax.block_until_ready(loss1)
    ref1 = _reference(x1, t1)
    assert jnp.allclose(loss1, ref1, **TOL), (loss1, ref1)

    # 2) Ragged shape: no padding, natural (B*C*H, W) view, single full block.
    x2 = jax.random.normal(k3, (2, 3, 17, 19), dtype=jnp.float32)
    t2 = jax.random.bernoulli(k4, p=0.4, shape=(2, 3, 17, 19)).astype(jnp.float32)
    loss2 = focal_loss(x2, t2)
    jax.block_until_ready(loss2)
    ref2 = _reference(x2, t2)
    assert jnp.allclose(loss2, ref2, **TOL), (loss2, ref2)

    # 3) bf16 {0,1} targets (exact in bf16) — halves the target HBM bytes.
    loss3 = focal_loss(x1, t1.astype(jnp.bfloat16))
    jax.block_until_ready(loss3)
    assert jnp.allclose(loss3, ref1, **TOL), (loss3, ref1)

    # 4) Force a multi-step grid with a ragged, masked final block on a small
    #    array by shrinking the per-block VMEM budget (17 rows of 128 lanes).
    x4 = jax.random.normal(k1, (2, 4, 17, 16), dtype=jnp.float32)
    t4 = jax.random.bernoulli(k2, p=0.5, shape=(2, 4, 17, 16)).astype(jnp.float32)
    loss4 = focal_loss(x4, t4, block_bytes=SUBLANES * LANES * 4)
    jax.block_until_ready(loss4)
    ref4 = _reference(x4, t4)
    assert jnp.allclose(loss4, ref4, **TOL), (loss4, ref4)

    print("KERNEL_OK")
</pallas_src>

<mosaic_0001>
module attributes {stable_mosaic.version = 11 : i64} {
  func.func @kernel(%arg0: i32, %arg1: memref<16x128xf32, #tpu.memory_space<vmem>>, %arg2: memref<16x128xf32, #tpu.memory_space<vmem>>, %arg3: memref<1x1x128xf32, #tpu.memory_space<vmem>>) attributes {dimension_semantics = [#tpu.dimension_semantics<parallel>], iteration_bounds = array<i64: 1>, scalar_prefetch = 0 : i64, scratch_operands = 0 : i64, tpu.core_type = #tpu.core_type<tc>, window_params = [{transform_indices = @transform_0, window_bounds = array<i64: 16, 128>}, {transform_indices = @transform_1, window_bounds = array<i64: 16, 128>}, {transform_indices = @transform_2, window_bounds = array<i64: 1, 1, 128>}]} {
    %c0 = arith.constant 0 : index
    %c0_0 = arith.constant 0 : index
    %0 = vector.load %arg1[%c0, %c0_0] : memref<16x128xf32, #tpu.memory_space<vmem>>, vector<16x128xf32>
    %c0_1 = arith.constant 0 : index
    %c0_2 = arith.constant 0 : index
    %1 = vector.load %arg2[%c0_1, %c0_2] : memref<16x128xf32, #tpu.memory_space<vmem>>, vector<16x128xf32>
    %cst = arith.constant 1.000000e+00 : f32
    %2 = vector.broadcast %cst : f32 to vector<16x128xf32>
    %3 = arith.cmpf oeq, %1, %2 : vector<16x128xf32>
    %cst_3 = arith.constant 0.000000e+00 : f32
    %4 = vector.broadcast %cst_3 : f32 to vector<16x128xf32>
    %5 = arith.subf %4, %0 : vector<16x128xf32>
    %6 = arith.select %3, %0, %5 : vector<16x128xi1>, vector<16x128xf32>
    %7 = math.absf %6 : vector<16x128xf32>
    %cst_4 = arith.constant 0.000000e+00 : f32
    %8 = vector.broadcast %cst_4 : f32 to vector<16x128xf32>
    %9 = arith.subf %8, %7 : vector<16x128xf32>
    %10 = math.exp %9 : vector<16x128xf32>
    %cst_5 = arith.constant 0.000000e+00 : f32
    %11 = vector.broadcast %cst_5 : f32 to vector<16x128xf32>
    %12 = arith.subf %11, %6 : vector<16x128xf32>
    %cst_6 = arith.constant 0.000000e+00 : f32
    %13 = vector.broadcast %cst_6 : f32 to vector<16x128xf32>
    %14 = arith.maximumf %12, %13 : vector<16x128xf32>
    %15 = math.log1p %10 : vector<16x128xf32>
    %16 = arith.addf %14, %15 : vector<16x128xf32>
    %cst_7 = arith.constant 0.000000e+00 : f32
    %17 = vector.broadcast %cst_7 : f32 to vector<16x128xf32>
    %18 = arith.cmpf oge, %6, %17 : vector<16x128xf32>
    %cst_8 = arith.constant 1.000000e+00 : f32
    %19 = vector.broadcast %cst_8 : f32 to vector<16x128xf32>
    %20 = arith.select %18, %10, %19 : vector<16x128xi1>, vector<16x128xf32>
    %cst_9 = arith.constant 1.000000e+00 : f32
    %21 = vector.broadcast %cst_9 : f32 to vector<16x128xf32>
    %22 = arith.addf %21, %10 : vector<16x128xf32>
    %23 = tpu.reciprocal %22 {approx = true} : vector<16x128xf32> -> vector<16x128xf32>
    %24 = arith.mulf %20, %23 : vector<16x128xf32>
    %cst_10 = arith.constant 1.500000e+00 : f32
    %cst_11 = arith.constant 7.500000e-01 : f32
    %25 = vector.broadcast %cst_10 : f32 to vector<16x128xf32>
    %26 = vector.broadcast %cst_11 : f32 to vector<16x128xf32>
    %27 = arith.select %3, %25, %26 : vector<16x128xi1>, vector<16x128xf32>
    %28 = arith.mulf %24, %24 : vector<16x128xf32>
    %29 = arith.mulf %27, %28 : vector<16x128xf32>
    %30 = arith.mulf %29, %16 : vector<16x128xf32>
    %cst_12 = arith.constant dense<0.000000e+00> : vector<128xf32>
    %31 = vector.multi_reduction <add>, %30, %cst_12 [0] : vector<16x128xf32> to vector<128xf32>
    %32 = vector.shape_cast %31 : vector<128xf32> to vector<1x128xf32>
    %33 = vector.shape_cast %32 : vector<1x128xf32> to vector<1x1x128xf32>
    %c0_13 = arith.constant 0 : index
    %c0_14 = arith.constant 0 : index
    %c0_15 = arith.constant 0 : index
    %34 = vector.load %arg3[%c0_13, %c0_14, %c0_15] : memref<1x1x128xf32, #tpu.memory_space<vmem>>, vector<1x1x128xf32>
    tpu.vector_store %arg3[%c0_13, %c0_14, %c0_15], %33 {strides = array<i32>} : memref<1x1x128xf32, #tpu.memory_space<vmem>>, vector<1x1x128xf32>,
    return
  }
  func.func @transform_0(%arg0: i32) -> (i32, i32) {
    %c0_i32 = arith.constant 0 : i32
    %c0_i32_0 = arith.constant 0 : i32
    return %arg0, %c0_i32 : i32, i32
  }
  func.func @transform_1(%arg0: i32) -> (i32, i32) {
    %c0_i32 = arith.constant 0 : i32
    %c0_i32_0 = arith.constant 0 : i32
    return %arg0, %c0_i32 : i32, i32
  }
  func.func @transform_2(%arg0: i32) -> (i32, i32, i32) {
    %c0_i32 = arith.constant 0 : i32
    %c0_i32_0 = arith.constant 0 : i32
    %c0_i32_1 = arith.constant 0 : i32
    return %arg0, %c0_i32, %c0_i32_0 : i32, i32, i32
  }
}

</mosaic_0001>

<bundles_post_ra>
// kernel: focal_loss.1
= control target key start
LH: loop header
LB: loop body
LE: loop exit
PB: predicated region body
PF: predicated region fallthrough
CT: control target
= control target key end

     0   :  { %v96_v43 = vmov 0.75   ;;  %s137_s0 = inlined_call_operand.vmem [shape: f32[16,128], index: 0, kind: input, shape index: {}]   ;;  %s138_s1 = inlined_call_operand.vmem [shape: f32[16,128], index: 1, kind: input, shape index: {}]   ;;  %s139_s2 = inlined_call_operand.vmem [shape: f32[1,1,128], index: 2, kind: output, shape index: {}]  }
   0x1   :  { %v11_v0 = vld [vmem:[%s137_s0] sm:$0xff]  ;;  %v12_v1 = vld [vmem:[%s137_s0 + $0x8] sm:$0xff] }
   0x2   :  { %v13_v2 = vld [vmem:[%s138_s1] sm:$0xff]  ;;  %v14_v3 = vld [vmem:[%s138_s1 + $0x8] sm:$0xff]  ;;  %v17_v4 = vsub.f32 0.0, %v11_v0  ;;  %v18_v5 = vsub.f32 0.0, %v12_v1 }
   0x3   :  { %vm15_vm0 = vcmp.eq.f32.partialorder %v13_v2, 1.0  ;;  %vm16_vm1 = vcmp.eq.f32.partialorder %v14_v3, 1.0 }
   0x4   :  { %v19_v6 = vsel %vm15_vm0, %v11_v0, %v17_v4  ;;  %v20_v7 = vsel %vm16_vm1, %v12_v1, %v18_v5  ;;  %v63_v44 = vsel %vm15_vm0, 1.5, %v96_v43  ;;  %v64_v46 = vsel %vm16_vm1, 1.5, %v96_v43 }
   0x5   :  { %v21_v8 = vand.u32 2147483647, %v19_v6  ;;  %v22_v9 = vand.u32 2147483647, %v20_v7  ;;  %v29_v23 = vsub.f32 0.0, %v19_v6  ;;  %vm53_vm2 = vcmp.ge.f32.partialorder %v19_v6, 0.0 }
   0x6   :  { %v30_v25 = vsub.f32 0.0, %v20_v7  ;;  %vm54_vm3 = vcmp.ge.f32.partialorder %v20_v7, 0.0 }
   0x7   :  { %v23_v10 = vsub.f32 0.0, %v21_v8  ;;  %v24_v11 = vsub.f32 0.0, %v22_v9  ;;  %v31_v32 = vmax.f32 %v29_v23, 0.0 }
   0x8   :  { %v32_v36 = vmax.f32 %v30_v25, 0.0 }
   0x9   :  { %v25_v12 = vmul.f32 1.442695, %v23_v10  ;;  %v27_v13 = vmul.f32 1.442695, %v24_v11 }
   0xb   :  { %84 = vpow2.f32 %v25_v12 }
   0xc   :  { %86 = vpow2.f32 %v27_v13 }
  0x15   :  { %v85_v14 = vpop.eup %84 }
  0x16   :  { %v87_v15 = vpop.eup %86  ;;  %v33_v16 = vadd.f32 1.0, %v85_v14  ;;  %v36_v18 = vmul.f32 -0.5, %v85_v14  ;;  %v39_v21 = vand.u32 2147483647, %v85_v14  ;;  %v55_v30 = vsel %vm53_vm2, %v85_v14, 1.0 }
  0x17   :  { %v42_v17 = vadd.f32 1.0, %v87_v15  ;;  %v45_v19 = vmul.f32 -0.5, %v87_v15  ;;  %v48_v24 = vand.u32 2147483647, %v87_v15  ;;  %v56_v34 = vsel %vm54_vm3, %v87_v15, 1.0 }
  0x18   :  { %88 = vlog2.f32 %v33_v16  ;;  %v37_v20 = vadd.f32 1.0, %v36_v18  ;;  %vm126_vm4 = vcmp.lt.f32.partialorder %v39_v21, 0.0004427343 }
  0x19   :  { %90 = vlog2.f32 %v42_v17  ;;  %v46_v22 = vadd.f32 1.0, %v45_v19  ;;  %vm49_vm5 = vcmp.lt.f32.partialorder %v48_v24, 0.0004427343 }
  0x1a   :  { %92 = vrcp.f32 %v33_v16  ;;  %v38_v26 = vmul.f32 %v85_v14, %v37_v20 }
  0x1b   :  { %94 = vrcp.f32 %v42_v17  ;;  %v47_v29 = vmul.f32 %v87_v15, %v46_v22 }
  0x22   :  { %v89_v27 = vpop.eup %88 }
  0x23   :  { %v91_v31 = vpop.eup %90  ;;  %v35_v33 = vmul.f32 0.6931472, %v89_v27 }
  0x24   :  { %v93_v35 = vpop.eup %92  ;;  %v44_v37 = vmul.f32 0.6931472, %v91_v31 }
  0x25   :  { %v95_v38 = vpop.eup %94  ;;  %v41_v39 = vsel %vm126_vm4, %v38_v26, %v35_v33  ;;  %v61_v40 = vmul.f32 %v93_v35, %v55_v30 }
  0x26   :  { %v50_v41 = vsel %vm49_vm5, %v47_v29, %v44_v37  ;;  %v62_v42 = vmul.f32 %v95_v38, %v56_v34  ;;  %v51_v45 = vadd.f32 %v41_v39, %v31_v32 }
  0x27   :  { %v65_v47 = vmul.f32 %v61_v40, %v61_v40  ;;  %v52_v48 = vadd.f32 %v50_v41, %v32_v36 }
  0x28   :  { %v66_v49 = vmul.f32 %v62_v42, %v62_v42 }
  0x29   :  { %v67_v50 = vmul.f32 %v65_v47, %v63_v44 }
  0x2a   :  { %v68_v51 = vmul.f32 %v66_v49, %v64_v46 }
  0x2b   :  { %v69_v52 = vmul.f32 %v67_v50, %v51_v45 }
  0x2c   :  { %v70_v53 = vmul.f32 %v68_v51, %v52_v48 }
  0x2e   :  { %v71_v54 = vadd.f32 %v70_v53, %v69_v52 }
  0x30   :  { %v72_v55 = vrot.slane %v71_v54, 4 }
  0x32   :  { %v73_v56 = vadd.f32 %v72_v55, %v71_v54 }
  0x34   :  { %v74_v57 = vrot.slane %v73_v56, 2 }
  0x36   :  { %v75_v58 = vadd.f32 %v74_v57, %v73_v56 }
  0x38   :  { %v76_v59 = vrot.slane %v75_v58, 1 }
  0x3a   :  { %v77_v60 = vadd.f32 %v76_v59, %v75_v58 }
  0x3c   :  { %78 = vst [vmem:[%s139_s2] sm:$0x1] %v77_v60 }

</bundles_post_ra>
